<compile_context>
chip_gen: v7x
topology: tpu7x:2x2x1
jax: 0.10.0
libtpu: 0.0.40
codegen_flags: <defaults>
</compile_context>

<pallas_src>
import jax
import jax.numpy as jnp
from jax.experimental import pallas as pl
from jax.experimental.pallas import tpu as pltpu


def _upsample1d_kernel(x_ref, pf_ref, nf_ref, w_ref, b_ref, y_ref):
    """One T-tile of the stride-2 transposed conv with fused even/odd interleave.

    x_ref : (B, Cin, TT)       input tile
    pf_ref: (1, Cout, B)       f32 halo fix  W3^T @ x[:, :, tile_start-1]  (zeros for first tile)
    nf_ref: (1, Cout, B)       f32 halo fix  W0^T @ x[:, :, tile_end]      (zeros for last tile)
    w_ref : (4*Cout, Cin)      stacked tap matrices; row k*Cout+d = W[:, d, k]
    b_ref : (Cout, 1)          bias (f32)
    y_ref : (B, Cout, 2*TT)    interleaved output tile
    """
    f32 = jnp.float32
    w_all = w_ref[...]                      # native dtype (bf16 stays bf16 on the MXU)
    bias = b_ref[...]                       # (Cout, 1) f32
    pf = pf_ref[0]                          # (Cout, B) f32
    nf = nf_ref[0]                          # (Cout, B) f32
    B, _, TT = x_ref.shape
    Cout = w_all.shape[0] // 4

    lane = jax.lax.broadcasted_iota(jnp.int32, (Cout, TT), 1)   # hoisted out of the loop

    for b in range(B):                      # B is small & static — unrolled
        # One weight-stationary MXU matmul per batch for all 4 taps, f32 accumulation.
        p = jnp.dot(w_all, x_ref[b], preferred_element_type=f32)    # (4*Cout, TT)
        p0, p1 = p[0:Cout], p[Cout:2 * Cout]
        p2, p3 = p[2 * Cout:3 * Cout], p[3 * Cout:4 * Cout]

        # even: y[2t]   = W1 x[t] + W3 x[t-1]  — roll on the output side (XLU),
        # column 0 patched with the precomputed halo contribution.
        even = p1 + jnp.where(lane == 0, pf[:, b:b + 1],
                              pltpu.roll(p3, shift=1, axis=1))
        # odd : y[2t+1] = W2 x[t] + W0 x[t+1] — column TT-1 patched with the halo fix.
        odd = p2 + jnp.where(lane == TT - 1, nf[:, b:b + 1],
                             pltpu.roll(p0, shift=TT - 1, axis=1))

        # In-register even/odd lane interleave -> (Cout, 2*TT); bias added once.
        y = jnp.stack([even, odd], axis=-1).reshape(Cout, 2 * TT) + bias
        y_ref[b] = y.astype(y_ref.dtype)


def _default_time_tile(T, B, C, itemsize):
    """Lane-aligned, VMEM-aware T tile that keeps >=2 grid steps when T >= 256."""
    if T % 128 != 0 or T <= 128:
        # TODO(synk): pad ragged T up to a multiple of 128 instead of one monolithic tile.
        return T

    def step_bytes(tt):
        # double-buffered input + interleaved-output blocks, plus in-kernel f32 temporaries
        return 2 * (B * C * tt + B * C * 2 * tt) * itemsize + 10 * C * tt * 4

    budget = 24 * 1024 * 1024   # conservative for v7x (64 MiB physical, 32 MiB scoped default)
    for cand in (1024, 512, 256, 128):
        if T % cand == 0 and T // cand >= 2 and step_bytes(cand) <= budget:
            return cand
    return 128


def upsample1d(x, weight_v, weight_g, bias, *, time_tile=None):
    """Forward pass of Upsample1d: weight_norm(ConvTranspose1d(dim, dim, 4, stride=2, padding=1)).

    x: (B, C, T) -> (B, C, 2*T).
    weight_v: (C, C, 4) 'v' of weight_norm; weight_g: (C, 1, 1) 'g'; bias: (C,).
    """
    B, Cin, T = x.shape
    Cin_w, Cout, K = weight_v.shape
    assert K == 4 and Cin_w == Cin

    # weight_norm (dim=0): W = g * v / ||v||, norm over each (out_channels, kernel) slice.
    v32 = weight_v.astype(jnp.float32)
    norm = jnp.sqrt(jnp.sum(jnp.square(v32), axis=(1, 2), keepdims=True))
    w_eff = weight_g.astype(jnp.float32) * v32 / norm                     # (Cin, Cout, K)
    # Stacked tap matrices (4*Cout, Cin) in the input dtype so bf16 hits the MXU natively.
    w_all = jnp.transpose(w_eff, (2, 1, 0)).reshape(K * Cout, Cin).astype(x.dtype)
    bias2d = bias.astype(jnp.float32).reshape(Cout, 1)

    itemsize = jnp.dtype(x.dtype).itemsize
    tt = time_tile if time_tile is not None else _default_time_tile(T, B, Cin, itemsize)
    assert T % tt == 0, "time_tile must divide T"
    assert tt == T or tt % 128 == 0, "time_tile must be lane-aligned (multiple of 128) or == T"
    nt = T // tt

    # Tiny precomputed halo contributions (f32):
    #   prev_fix[t] = W3^T @ x[:, :, t*tt - 1]     (zeros for t == 0)
    #   next_fix[t] = W0^T @ x[:, :, (t+1)*tt]     (zeros for t == nt-1)
    w0 = w_eff[:, :, 0]
    w3 = w_eff[:, :, 3]
    if nt > 1:
        pe = x[:, :, tt - 1:T - 1:tt].astype(jnp.float32)                 # (B, Cin, nt-1)
        ne = x[:, :, tt::tt].astype(jnp.float32)                          # (B, Cin, nt-1)
        pf = jnp.einsum('bct,cd->tdb', pe, w3)                            # (nt-1, Cout, B)
        nf = jnp.einsum('bct,cd->tdb', ne, w0)
        zeros = jnp.zeros((1, Cout, B), jnp.float32)
        prev_fix = jnp.concatenate([zeros, pf], axis=0)                   # (nt, Cout, B)
        next_fix = jnp.concatenate([nf, zeros], axis=0)
    else:
        prev_fix = jnp.zeros((1, Cout, B), jnp.float32)
        next_fix = jnp.zeros((1, Cout, B), jnp.float32)

    cost = pl.CostEstimate(
        flops=2 * B * (K * Cout) * Cin * T,
        transcendentals=0,
        bytes_accessed=(B * Cin * T + B * Cout * 2 * T) * itemsize
                       + K * Cout * Cin * itemsize + 2 * nt * Cout * B * 4 + Cout * 4,
    )

    y = pl.pallas_call(
        _upsample1d_kernel,
        grid=(nt,),
        in_specs=[
            pl.BlockSpec((B, Cin, tt), lambda t: (0, 0, t)),              # input tile
            pl.BlockSpec((1, Cout, B), lambda t: (t, 0, 0)),              # prev halo fix
            pl.BlockSpec((1, Cout, B), lambda t: (t, 0, 0)),              # next halo fix
            pl.BlockSpec((K * Cout, Cin), lambda t: (0, 0)),              # stacked taps (constant)
            pl.BlockSpec((Cout, 1), lambda t: (0, 0)),                    # bias
        ],
        out_specs=pl.BlockSpec((B, Cout, 2 * tt), lambda t: (0, 0, t)),   # fused interleaved output
        out_shape=jax.ShapeDtypeStruct((B, Cout, 2 * T), x.dtype),
        compiler_params=pltpu.CompilerParams(
            dimension_semantics=("parallel",),        # independent T tiles -> v7x 2-TC sharding
            vmem_limit_bytes=32 * 1024 * 1024,        # tile chooser keeps <=24 MiB per step
        ),
        cost_estimate=cost,
    )(x, prev_fix, next_fix, w_all, bias2d)
    return y


# -------------------------- pure-JAX reference & test ---------------------------

def _conv_transpose1d_ref(x, w, bias, stride=2, padding=1):
    """Direct ConvTranspose1d reference: y[b,d,o] = bias[d] + sum x[b,c,i] w[c,d,k], o = i*stride - pad + k."""
    B, Cin, T = x.shape
    _, Cout, K = w.shape
    full_len = (T - 1) * stride + K
    full = jnp.zeros((B, Cout, full_len), jnp.float32)
    for k in range(K):
        contrib = jnp.einsum('bct,cd->bdt', x.astype(jnp.float32), w[:, :, k].astype(jnp.float32))
        full = full.at[:, :, k:k + stride * (T - 1) + 1:stride].add(contrib)
    out_len = (T - 1) * stride - 2 * padding + K
    return full[:, :, padding:padding + out_len] + bias.astype(jnp.float32)[None, :, None]


def _weight_norm_weight(v, g):
    norm = jnp.sqrt(jnp.sum(jnp.square(v.astype(jnp.float32)), axis=(1, 2), keepdims=True))
    return g.astype(jnp.float32) * v.astype(jnp.float32) / norm


def _run_case(key, B, C, T, time_tile=None):
    kx, kv, kg, kb = jax.random.split(key, 4)
    x = jax.random.normal(kx, (B, C, T), dtype=jnp.float32)
    v = 0.3 * jax.random.normal(kv, (C, C, 4), dtype=jnp.float32)
    g = 1.0 + 0.1 * jax.random.normal(kg, (C, 1, 1), dtype=jnp.float32)
    b = 0.1 * jax.random.normal(kb, (C,), dtype=jnp.float32)

    y = upsample1d(x, v, g, b, time_tile=time_tile)
    y = jax.block_until_ready(y)

    y_ref = _conv_transpose1d_ref(x, _weight_norm_weight(v, g), b)
    assert y.shape == (B, C, 2 * T), (y.shape, (B, C, 2 * T))
    assert jnp.allclose(y, y_ref, atol=1e-4, rtol=1e-4), \
        f"max abs err {jnp.max(jnp.abs(y - y_ref))}"
    return y


if __name__ == "__main__":
    key = jax.random.PRNGKey(0)
    k1, k2, k3 = jax.random.split(key, 3)

    # Small shape consistent with the module: batch=2, channels(dim)=8, time=16.
    _run_case(k1, B=2, C=8, T=16)

    # Multi-tile (halo + fused interleave) path: T=256 split into two 128-lane tiles.
    _run_case(k2, B=2, C=8, T=256, time_tile=128)

    # Default VMEM-aware tile selection path (T=512 -> tt=256, 2 grid steps).
    _run_case(k3, B=2, C=8, T=512)

    print("KERNEL_OK")
</pallas_src>

<mosaic_0001>
module attributes {stable_mosaic.version = 11 : i64} {
  func.func @_upsample1d_kernel(%arg0: i32, %arg1: memref<2x8x16xf32, #tpu.memory_space<vmem>>, %arg2: memref<1x8x2xf32, #tpu.memory_space<vmem>>, %arg3: memref<1x8x2xf32, #tpu.memory_space<vmem>>, %arg4: memref<32x8xf32, #tpu.memory_space<vmem>>, %arg5: memref<8x1xf32, #tpu.memory_space<vmem>>, %arg6: memref<2x8x32xf32, #tpu.memory_space<vmem>>) attributes {dimension_semantics = [#tpu.dimension_semantics<parallel>], iteration_bounds = array<i64: 1>, scalar_prefetch = 0 : i64, scratch_operands = 0 : i64, tpu.core_type = #tpu.core_type<tc>, window_params = [{transform_indices = @transform_0, window_bounds = array<i64: 2, 8, 16>}, {transform_indices = @transform_1, window_bounds = array<i64: 1, 8, 2>}, {transform_indices = @transform_2, window_bounds = array<i64: 1, 8, 2>}, {pipeline_mode = #tpu.pipeline_mode<synchronous>, transform_indices = @transform_3, window_bounds = array<i64: 32, 8>}, {pipeline_mode = #tpu.pipeline_mode<synchronous>, transform_indices = @transform_4, window_bounds = array<i64: 8, 1>}, {transform_indices = @transform_5, window_bounds = array<i64: 2, 8, 32>}]} {
    %c0 = arith.constant 0 : index
    %c0_0 = arith.constant 0 : index
    %0 = vector.load %arg4[%c0, %c0_0] : memref<32x8xf32, #tpu.memory_space<vmem>>, vector<32x8xf32>
    %c0_1 = arith.constant 0 : index
    %c0_2 = arith.constant 0 : index
    %1 = vector.load %arg5[%c0_1, %c0_2] : memref<8x1xf32, #tpu.memory_space<vmem>>, vector<8x1xf32>
    %c0_3 = arith.constant 0 : index
    %c0_4 = arith.constant 0 : index
    %c0_5 = arith.constant 0 : index
    %2 = vector.load %arg2[%c0_3, %c0_4, %c0_5] : memref<1x8x2xf32, #tpu.memory_space<vmem>>, vector<1x8x2xf32>
    %3 = vector.shape_cast %2 : vector<1x8x2xf32> to vector<8x2xf32>
    %c0_6 = arith.constant 0 : index
    %c0_7 = arith.constant 0 : index
    %c0_8 = arith.constant 0 : index
    %4 = vector.load %arg3[%c0_6, %c0_7, %c0_8] : memref<1x8x2xf32, #tpu.memory_space<vmem>>, vector<1x8x2xf32>
    %5 = vector.shape_cast %4 : vector<1x8x2xf32> to vector<8x2xf32>
    %6 = tpu.iota {dimensions = array<i32: 1>} : vector<8x16xi32>
    %c0_9 = arith.constant 0 : index
    %c0_10 = arith.constant 0 : index
    %c0_11 = arith.constant 0 : index
    %7 = vector.load %arg1[%c0_9, %c0_10, %c0_11] : memref<2x8x16xf32, #tpu.memory_space<vmem>>, vector<1x8x16xf32>
    %8 = vector.shape_cast %7 : vector<1x8x16xf32> to vector<8x16xf32>
    %cst = arith.constant dense<0.000000e+00> : vector<32x16xf32>
    %9 = tpu.matmul %0, %8, %cst {dimension_numbers = #tpu.dot_dimension_numbers<[1], [0], [0], [1], [0, 0, 1, 1], [], []>} : vector<32x8xf32>, vector<8x16xf32>, vector<32x16xf32> -> vector<32x16xf32>
    %10 = vector.extract_strided_slice %9 {offsets = [0, 0], sizes = [8, 16], strides = [1, 1]} : vector<32x16xf32> to vector<8x16xf32>
    %11 = vector.extract_strided_slice %9 {offsets = [8, 0], sizes = [8, 16], strides = [1, 1]} : vector<32x16xf32> to vector<8x16xf32>
    %12 = vector.extract_strided_slice %9 {offsets = [16, 0], sizes = [8, 16], strides = [1, 1]} : vector<32x16xf32> to vector<8x16xf32>
    %13 = vector.extract_strided_slice %9 {offsets = [24, 0], sizes = [8, 16], strides = [1, 1]} : vector<32x16xf32> to vector<8x16xf32>
    %c0_i32 = arith.constant 0 : i32
    %14 = vector.broadcast %c0_i32 : i32 to vector<8x16xi32>
    %15 = arith.cmpi eq, %6, %14 : vector<8x16xi32>
    %16 = vector.extract_strided_slice %3 {offsets = [0, 0], sizes = [8, 1], strides = [1, 1]} : vector<8x2xf32> to vector<8x1xf32>
    %c1_i32 = arith.constant 1 : i32
    %17 = tpu.dynamic_rotate %13 by %c1_i32 dim 1 : vector<8x16xf32>, i32 -> vector<8x16xf32>
    %18 = vector.shape_cast %16 : vector<8x1xf32> to vector<8x1xf32>
    %19 = vector.broadcast %18 : vector<8x1xf32> to vector<8x16xf32>
    %20 = arith.select %15, %19, %17 : vector<8x16xi1>, vector<8x16xf32>
    %21 = arith.addf %11, %20 : vector<8x16xf32>
    %c15_i32 = arith.constant 15 : i32
    %22 = vector.broadcast %c15_i32 : i32 to vector<8x16xi32>
    %23 = arith.cmpi eq, %6, %22 : vector<8x16xi32>
    %24 = vector.extract_strided_slice %5 {offsets = [0, 0], sizes = [8, 1], strides = [1, 1]} : vector<8x2xf32> to vector<8x1xf32>
    %c15_i32_12 = arith.constant 15 : i32
    %25 = tpu.dynamic_rotate %10 by %c15_i32_12 dim 1 : vector<8x16xf32>, i32 -> vector<8x16xf32>
    %26 = vector.shape_cast %24 : vector<8x1xf32> to vector<8x1xf32>
    %27 = vector.broadcast %26 : vector<8x1xf32> to vector<8x16xf32>
    %28 = arith.select %23, %27, %25 : vector<8x16xi1>, vector<8x16xf32>
    %29 = arith.addf %12, %28 : vector<8x16xf32>
    %30 = vector.shape_cast %21 : vector<8x16xf32> to vector<8x16x1xf32>
    %31 = vector.shape_cast %29 : vector<8x16xf32> to vector<8x16x1xf32>
    %32 = tpu.concatenate %30, %31 in 2 : vector<8x16x1xf32>, vector<8x16x1xf32> -> vector<8x16x2xf32>
    %33 = vector.shape_cast %32 : vector<8x16x2xf32> to vector<8x32xf32>
    %34 = vector.broadcast %1 : vector<8x1xf32> to vector<8x32xf32>
    %35 = arith.addf %33, %34 : vector<8x32xf32>
    %c0_13 = arith.constant 0 : index
    %c0_14 = arith.constant 0 : index
    %c0_15 = arith.constant 0 : index
    %36 = vector.load %arg6[%c0_13, %c0_14, %c0_15] : memref<2x8x32xf32, #tpu.memory_space<vmem>>, vector<1x8x32xf32>
    %37 = vector.shape_cast %36 : vector<1x8x32xf32> to vector<8x32xf32>
    %38 = vector.shape_cast %35 : vector<8x32xf32> to vector<1x8x32xf32>
    tpu.vector_store %arg6[%c0_13, %c0_14, %c0_15], %38 {strides = array<i32>} : memref<2x8x32xf32, #tpu.memory_space<vmem>>, vector<1x8x32xf32>,
    %c1 = arith.constant 1 : index
    %c0_16 = arith.constant 0 : index
    %c0_17 = arith.constant 0 : index
    %39 = vector.load %arg1[%c1, %c0_16, %c0_17] : memref<2x8x16xf32, #tpu.memory_space<vmem>>, vector<1x8x16xf32>
    %40 = vector.shape_cast %39 : vector<1x8x16xf32> to vector<8x16xf32>
    %cst_18 = arith.constant dense<0.000000e+00> : vector<32x16xf32>
    %41 = tpu.matmul %0, %40, %cst_18 {dimension_numbers = #tpu.dot_dimension_numbers<[1], [0], [0], [1], [0, 0, 1, 1], [], []>} : vector<32x8xf32>, vector<8x16xf32>, vector<32x16xf32> -> vector<32x16xf32>
    %42 = vector.extract_strided_slice %41 {offsets = [0, 0], sizes = [8, 16], strides = [1, 1]} : vector<32x16xf32> to vector<8x16xf32>
    %43 = vector.extract_strided_slice %41 {offsets = [8, 0], sizes = [8, 16], strides = [1, 1]} : vector<32x16xf32> to vector<8x16xf32>
    %44 = vector.extract_strided_slice %41 {offsets = [16, 0], sizes = [8, 16], strides = [1, 1]} : vector<32x16xf32> to vector<8x16xf32>
    %45 = vector.extract_strided_slice %41 {offsets = [24, 0], sizes = [8, 16], strides = [1, 1]} : vector<32x16xf32> to vector<8x16xf32>
    %c0_i32_19 = arith.constant 0 : i32
    %46 = vector.broadcast %c0_i32_19 : i32 to vector<8x16xi32>
    %47 = arith.cmpi eq, %6, %46 : vector<8x16xi32>
    %48 = vector.extract_strided_slice %3 {offsets = [0, 1], sizes = [8, 1], strides = [1, 1]} : vector<8x2xf32> to vector<8x1xf32>
    %c1_i32_20 = arith.constant 1 : i32
    %49 = tpu.dynamic_rotate %45 by %c1_i32_20 dim 1 : vector<8x16xf32>, i32 -> vector<8x16xf32>
    %50 = vector.shape_cast %48 : vector<8x1xf32> to vector<8x1xf32>
    %51 = vector.broadcast %50 : vector<8x1xf32> to vector<8x16xf32>
    %52 = arith.select %47, %51, %49 : vector<8x16xi1>, vector<8x16xf32>
    %53 = arith.addf %43, %52 : vector<8x16xf32>
    %c15_i32_21 = arith.constant 15 : i32
    %54 = vector.broadcast %c15_i32_21 : i32 to vector<8x16xi32>
    %55 = arith.cmpi eq, %6, %54 : vector<8x16xi32>
    %56 = vector.extract_strided_slice %5 {offsets = [0, 1], sizes = [8, 1], strides = [1, 1]} : vector<8x2xf32> to vector<8x1xf32>
    %c15_i32_22 = arith.constant 15 : i32
    %57 = tpu.dynamic_rotate %42 by %c15_i32_22 dim 1 : vector<8x16xf32>, i32 -> vector<8x16xf32>
    %58 = vector.shape_cast %56 : vector<8x1xf32> to vector<8x1xf32>
    %59 = vector.broadcast %58 : vector<8x1xf32> to vector<8x16xf32>
    %60 = arith.select %55, %59, %57 : vector<8x16xi1>, vector<8x16xf32>
    %61 = arith.addf %44, %60 : vector<8x16xf32>
    %62 = vector.shape_cast %53 : vector<8x16xf32> to vector<8x16x1xf32>
    %63 = vector.shape_cast %61 : vector<8x16xf32> to vector<8x16x1xf32>
    %64 = tpu.concatenate %62, %63 in 2 : vector<8x16x1xf32>, vector<8x16x1xf32> -> vector<8x16x2xf32>
    %65 = vector.shape_cast %64 : vector<8x16x2xf32> to vector<8x32xf32>
    %66 = vector.broadcast %1 : vector<8x1xf32> to vector<8x32xf32>
    %67 = arith.addf %65, %66 : vector<8x32xf32>
    %c1_23 = arith.constant 1 : index
    %c0_24 = arith.constant 0 : index
    %c0_25 = arith.constant 0 : index
    %68 = vector.load %arg6[%c1_23, %c0_24, %c0_25] : memref<2x8x32xf32, #tpu.memory_space<vmem>>, vector<1x8x32xf32>
    %69 = vector.shape_cast %68 : vector<1x8x32xf32> to vector<8x32xf32>
    %70 = vector.shape_cast %67 : vector<8x32xf32> to vector<1x8x32xf32>
    tpu.vector_store %arg6[%c1_23, %c0_24, %c0_25], %70 {strides = array<i32>} : memref<2x8x32xf32, #tpu.memory_space<vmem>>, vector<1x8x32xf32>,
    return
  }
  func.func @transform_0(%arg0: i32) -> (i32, i32, i32) {
    %c0_i32 = arith.constant 0 : i32
    %c0_i32_0 = arith.constant 0 : i32
    %c0_i32_1 = arith.constant 0 : i32
    return %c0_i32, %c0_i32_0, %arg0 : i32, i32, i32
  }
  func.func @transform_1(%arg0: i32) -> (i32, i32, i32) {
    %c0_i32 = arith.constant 0 : i32
    %c0_i32_0 = arith.constant 0 : i32
    %c0_i32_1 = arith.constant 0 : i32
    return %arg0, %c0_i32, %c0_i32_0 : i32, i32, i32
  }
  func.func @transform_2(%arg0: i32) -> (i32, i32, i32) {
    %c0_i32 = arith.constant 0 : i32
    %c0_i32_0 = arith.constant 0 : i32
    %c0_i32_1 = arith.constant 0 : i32
    return %arg0, %c0_i32, %c0_i32_0 : i32, i32, i32
  }
  func.func @transform_3(%arg0: i32) -> (i32, i32) {
    %c0_i32 = arith.constant 0 : i32
    %c0_i32_0 = arith.constant 0 : i32
    %c0_i32_1 = arith.constant 0 : i32
    return %c0_i32, %c0_i32_0 : i32, i32
  }
  func.func @transform_4(%arg0: i32) -> (i32, i32) {
    %c0_i32 = arith.constant 0 : i32
    %c0_i32_0 = arith.constant 0 : i32
    %c0_i32_1 = arith.constant 0 : i32
    return %c0_i32, %c0_i32_0 : i32, i32
  }
  func.func @transform_5(%arg0: i32) -> (i32, i32, i32) {
    %c0_i32 = arith.constant 0 : i32
    %c0_i32_0 = arith.constant 0 : i32
    %c0_i32_1 = arith.constant 0 : i32
    return %c0_i32, %c0_i32_0, %arg0 : i32, i32, i32
  }
}

</mosaic_0001>

<bundles_post_ra>
// kernel: tpu_custom_call.1
= control target key start
LH: loop header
LB: loop body
LE: loop exit
PB: predicated region body
PF: predicated region fallthrough
CT: control target
= control target key end

     0   :  { %vm31_vm0 = vcmask 64512   ;;  %s2086_s0 = inlined_call_operand.vmem [shape: f32[2,8,16], index: 0, kind: input, shape index: {}]   ;;  %s2087_s1 = inlined_call_operand.vmem [shape: f32[1,8,2], index: 1, kind: input, shape index: {}]   ;;  %s2088_s2 = inlined_call_operand.vmem [shape: f32[1,8,2], index: 2, kind: input, shape index: {}]   ;;  %s2089_s3 = inlined_call_operand.vmem [shape: f32[32,8], index: 3, kind: input, shape index: {}]   ;;  %s2090_s4 = inlined_call_operand.vmem [shape: f32[8,1], index: 4, kind: input, shape index: {}]   ;;  %s2091_s5 = inlined_call_operand.hbm [shape: f32[2,8,32], index: 5, kind: output, shape index: {}]  }
   0x1   :  { %v30_v0 = vld [vmem:[%s2086_s0] sm:$0xff]  ;;  %v1409_v1 = vld [vmem:[%s2086_s0 + $0x8] sm:$0xff]  ;;  %v23_v4 = vld [vmem:[%s2089_s3 + $0x10] sm:$0xff] }
   0x2   :  { %v21_v2 = vld [vmem:[%s2089_s3] sm:$0xff]  ;;  %1424 = vmatprep.subr.mxu0 %v30_v0  ;;  %1432 = vmatprep.subr.mxu1 %v1409_v1  ;;  %v22_v3 = vld [vmem:[%s2089_s3 + $0x8] sm:$0xff] }
   0x3   :  { %1425 = vmatpush3.msra.mxu0 %v30_v0  ;;  %1426 = vmatprep.mubr.msk.f32.mxu0 %vm31_vm0, %v21_v2 }
   0x4   :  { %10 = vsyncpa [#allocation3], 0  ;;  %1433 = vmatpush3.msra.mxu1 %v1409_v1  ;;  %1434 = vmatprep.mubr.msk.f32.mxu1 %vm31_vm0, %v21_v2  ;;  %v24_v5 = vld [vmem:[%s2089_s3 + $0x18] sm:$0xff]  ;;  %v1492_v6 = vmov 0   ;;  %s1493_s29 = smov 16   ;;  %v26_v15 = vld [vmem:[%s2087_s1] sm:$0xff]  ;;  %v28_v38 = vlaneseq }
   0x5   :  { %1427 = vmatmul.mubr.msk.f32.vlgmr.msra.gmra.mrb[0].mxu0 %vm31_vm0, %v22_v3  ;;  %1435 = vmatmul.mubr.msk.f32.vlgmr.msra.gmra.mrb[0].mxu1 %vm31_vm0, %v22_v3  ;;  %v27_v16 = vld [vmem:[%s2088_s2] sm:$0xff]  ;;  %v1494_v17 = vmov 1   ;;  %vm130_vm1 = vcmask 1047680   ;;  %s1495_s1 = smov 127   ;;  %s1496_s2 = smov 113   ;;  %vm342_vm4 = vcmask 7168  }
   0x6   :  { %1429 = vmatprep.mubr.msk.f32.mxu0 %vm31_vm0, %v23_v4  ;;  %1437 = vmatprep.mubr.msk.f32.mxu1 %vm31_vm0, %v23_v4  ;;  %v29_v39 = vand.u32 127, %v28_v38  ;;  %v1601_v40 = vshrl.u32 %v28_v38, 7  ;;  %s1500_s10 = smov 4   ;;  %s1501_s11 = smov 6   ;;  %vm691_vm5 = vcmask 15360   ;;  %vm693_vm6 = vcmask 31744  }
   0x7   :  { %1463 = vset.pattern.permute.xlu0 %v1492_v6  ;;  %1464 = vset.pattern.permute.xlu1 %v1492_v6  ;;  %s1502_s12 = smov 8   ;;  %s1503_s13 = smov 10   ;;  %vm695_vm7 = vcmask 48128   ;;  %vm698_vm8 = vcmask 80896   ;;  %vm700_vm9 = vcmask 97280   ;;  %vm702_vm10 = vcmask 113664  }
   0x8   :  { %vm148_vm2 = vcmp.eq.s32.totalorder %v29_v39, 15  ;;  %vm129_vm3 = vcmp.eq.s32.totalorder %v29_v39, 0  ;;  %v1604_v43 = vsub.s32 0, %v1601_v40  ;;  %v1610_v48 = vsub.s32 1, %v1601_v40  ;;  %s1504_s14 = smov 12   ;;  %s1505_s15 = smov 14  }
   0x9   :  { %1430 = vmatmul.mubr.msk.f32.gmra.mrb[2].mxu0 %vm31_vm0, %v24_v5  ;;  %1438 = vmatmul.mubr.msk.f32.gmra.mrb[2].mxu1 %vm31_vm0, %v24_v5  ;;  %v1613_v49 = vsub.s32 2, %v1601_v40  ;;  %v1616_v50 = vsub.s32 3, %v1601_v40  ;;  %v223_v51 = vsub.s32 5, %v1601_v40  ;;  %v1621_v54 = vsub.s32 4, %v1601_v40  ;;  %s1506_s16 = smov 18   ;;  %s1507_s17 = smov 20  }
   0xa   :  { %v245_v55 = vsub.s32 7, %v1601_v40  ;;  %v234_v56 = vsub.s32 6, %v1601_v40  ;;  %s1508_s18 = smov 22   ;;  %s1509_s19 = smov 24   ;;  %vm704_vm11 = vcmask 130048   ;;  %vm706_vm12 = vcmask 146432  }
   0xb   :  { %s1510_s20 = smov 26   ;;  %s1511_s21 = smov 28   ;;  %vm708_vm13 = vcmask 162816   ;;  %vm710_vm14 = vcmask 179200   ;;  %vm712_vm15 = vcmask 195584  }
   0xc   :  { %s1512_s22 = smov 30   ;;  %s1513_s23 = smov [#allocation2]  }
   0xd   :  { %s1394_s24 = sshll.u32 %s1513_s23, 4  ;;  %s1395_s24 = int_to_ptr.vmem [resolvable:$true] %s1394_s24 }
   0xe   :  { %s1468_s25 = scalar_lea.vmem %s1395_s24, 256  ;;  %p1473_p1 = scmp.lt.s32.totalorder %s1395_s24, %s1395_s24 }
   0xf   :  { %p1469_p0 = scmp.ne.s32.totalorder %s1395_s24, %s1468_s25  ;;  %p1474_p2 = scmp.lt.s32.totalorder %s1468_s25, %s1468_s25 }
  0x11   :  { %p1475_p3 = por %p1474_p2, %p1473_p1 }
  0x13   :  { %p1476_p4 = pnand %p1475_p3, %p1469_p0 }
  0xd8   :  { %v1571_v7 = vpop.f32.mrb[0].mxu0  ;;  %v1573_v8 = vpop.f32.mrb[0].mxu1 }
  0xd9   :  { %v110_v9 = vpop.f32.mrb[1].mxu0  ;;  %v796_v10 = vpop.f32.mrb[1].mxu1 }
  0xdc   :  { %v1431_v11 = vpop.f32.mrb[2].mxu0  ;;  %v1439_v12 = vpop.f32.mrb[2].mxu1 }
  0xdd   :  { %815 = vrot.lane.b32.xlu1 %v1439_v12, %s1493_s29  ;;  %131 = vrot.lane.b32.xlu0 %v1431_v11, %s1493_s29  ;;  %v120_v13 = vpop.f32.mrb[3].mxu0  ;;  %v1577_v14 = vpop.f32.mrb[3].mxu1 }
  0xe1   :  { %831 = vrot.lane.b32.xlu1 %v796_v10, %s1493_s29  ;;  %149 = vrot.lane.b32.xlu0 %v110_v9, %s1493_s29 }
  0xe5   :  { %139 = vperm.xlu0 %1463, %v26_v15   ;;  %157 = vperm.xlu1 %1464, %v27_v16  }
  0xe9   :  { %1466 = vset.pattern.permute.xlu0 %v1494_v17  ;;  %1465 = vset.pattern.permute.xlu1 %v1494_v17 }
  0xea   :  { %838 = vperm.xlu0 %1466, %v27_v16   ;;  %822 = vperm.xlu1 %1465, %v26_v15  }
  0xee   :  { %1467 = vset.pattern.permute.xlu1 %v1492_v6 }
 0x14f   :  { %v816_v18 = vpop.permute.xlu1 %815  ;;  %v132_v19 = vpop.permute.xlu0 %131 }
 0x150   :  { %v133_v20 = vsel %vm130_vm1, %v132_v19, %v1431_v11  ;;  %v817_v22 = vsel %vm130_vm1, %v816_v18, %v1439_v12 }
 0x151   :  { %134 = vrot.lane.b32.xlu0 %v133_v20, %s1493_s29 }
 0x153   :  { %v150_v21 = vpop.permute.xlu0 %149  ;;  %v832_v24 = vpop.permute.xlu1 %831 }
 0x154   :  { %v151_v23 = vsel %vm130_vm1, %v150_v21, %v110_v9  ;;  %v833_v25 = vsel %vm130_vm1, %v832_v24, %v796_v10 }
 0x155   :  { %818 = vrot.lane.b32.xlu0 %v817_v22, %s1493_s29  ;;  %152 = vrot.lane.b32.xlu1 %v151_v23, %s1493_s29 }
 0x159   :  { %834 = vrot.lane.b32.xlu1 %v833_v25, %s1493_s29 }
 0x164   :  { %v140_v26 = vpop.permute.xlu0 %139  ;;  %v158_v27 = vpop.permute.xlu1 %157 }
 0x169   :  { %v1595_v28 = vpop.permute.xlu0 %838  ;;  %v823_v29 = vpop.permute.xlu1 %822 }
 0x1c3   :  { %v135_v30 = vpop.permute.xlu0 %134 }
 0x1c4   :  { %v136_v37 = vsel %vm130_vm1, %v135_v30, %v1431_v11 }
 0x1c7   :  { %v153_v31 = vpop.permute.xlu1 %152  ;;  %v819_v32 = vpop.permute.xlu0 %818 }
 0x1c8   :  { %v154_v33 = vsel %vm130_vm1, %v153_v31, %v110_v9  ;;  %v820_v34 = vsel %vm130_vm1, %v819_v32, %v1439_v12 }
 0x1c9   :  { %161 = vrot.lane.b32.xlu1 %v154_v33, %s1495_s1  ;;  %826 = vrot.lane.b32.xlu0 %v820_v34, %s1496_s2 }
 0x1cb   :  { %v835_v35 = vpop.permute.xlu1 %834 }
 0x1cc   :  { %v836_v36 = vsel %vm130_vm1, %v835_v35, %v796_v10  ;;  %v25_v35 = vld [vmem:[%s2090_s4] sm:$0xff]  ;;  %s1499_s4 = smov 2   ;;  %vm714_vm1 = vcmask 211968  }
 0x1cd   :  { %842 = vrot.lane.b32.xlu1 %v836_v36, %s1495_s1 }
 0x1d1   :  { %143 = vrot.lane.b32.xlu1 %v136_v37, %s1496_s2 }
 0x23b   :  { %v162_v41 = vpop.permute.xlu1 %161  ;;  %v827_v42 = vpop.permute.xlu0 %826 }
 0x23c   :  { %v164_v44 = vsel %vm148_vm2, %v158_v27, %v162_v41  ;;  %v829_v45 = vsel %vm129_vm3, %v823_v29, %v827_v42 }
 0x23d   :  { %v165_v46 = vadd.f32 %v164_v44, %v120_v13  ;;  %v830_v47 = vadd.f32 %v1573_v8, %v829_v45 }
 0x23f   :  { %v843_v52 = vpop.permute.xlu1 %842  ;;  %v257_v53 = vrot.slane %v165_v46, %v1604_v43  ;;  %v1626_v57 = vrot.slane %v830_v47, %v1610_v48  ;;  %v1629_v58 = vrot.slane %v830_v47, %v1604_v43  ;;  %v1632_v59 = vrot.slane %v830_v47, %v1616_v50 }
 0x240   :  { %v1635_v60 = vrot.slane %v830_v47, %v1613_v49  ;;  %v1637_v61 = vrot.slane %v830_v47, %v223_v51  ;;  %v268_v63 = vrot.slane %v165_v46, %v1610_v48  ;;  %v1645_v2 = vrot.slane %v830_v47, %v1621_v54 }
 0x241   :  { %263 = vbcast.lane.b32.xlu1 %v257_v53, 264  ;;  %259 = vbcast.lane.b32.xlu0 %v257_v53, 256  ;;  %v1647_v3 = vrot.slane %v830_v47, %v245_v55  ;;  %v1649_v4 = vrot.slane %v830_v47, %v234_v56  ;;  %v279_v5 = vrot.slane %v165_v46, %v1613_v49 }
 0x242   :  { %v312_v10 = vrot.slane %v165_v46, %v223_v51  ;;  %v301_v11 = vrot.slane %v165_v46, %v1621_v54  ;;  %v845_v12 = vsel %vm148_vm2, %v1595_v28, %v843_v52  ;;  %v334_v15 = vrot.slane %v165_v46, %v245_v55 }
 0x243   :  { %v144_v62 = vpop.permute.xlu1 %143  ;;  %v846_v13 = vadd.f32 %v845_v12, %v1577_v14  ;;  %v323_v16 = vrot.slane %v165_v46, %v234_v56  ;;  %vm716_vm2 = vcmask 228352  }
 0x244   :  { %v146_v0 = vsel %vm129_vm3, %v140_v26, %v144_v62  ;;  %vm718_vm3 = vcmask 244736  }
 0x245   :  { %v1642_v1 = vadd.f32 %v1571_v7, %v146_v0  ;;  %274 = vbcast.lane.b32.xlu1 %v268_v63, 264  ;;  %270 = vbcast.lane.b32.xlu0 %v268_v63, 256  ;;  %v290_v7 = vrot.slane %v165_v46, %v1616_v50  ;;  %v949_v17 = vrot.slane %v846_v13, %v1610_v48  ;;  %v1497_v63 = vmov 1983009808  }
 0x246   :  { %v938_v18 = vrot.slane %v846_v13, %v1604_v43  ;;  %v971_v19 = vrot.slane %v846_v13, %v1616_v50  ;;  %v960_v20 = vrot.slane %v846_v13, %v1613_v49  ;;  %v993_v21 = vrot.slane %v846_v13, %v223_v51 }
 0x247   :  { %v224_v6 = vrot.slane %v1642_v1, %v223_v51  ;;  %v235_v8 = vrot.slane %v1642_v1, %v234_v56  ;;  %v246_v9 = vrot.slane %v1642_v1, %v245_v55  ;;  %v982_v22 = vrot.slane %v846_v13, %v1621_v54 }
 0x248   :  { %v1015_v14 = vrot.slane %v846_v13, %v245_v55  ;;  %v1004_v23 = vrot.slane %v846_v13, %v234_v56  ;;  %v169_v24 = vrot.slane %v1642_v1, %v1604_v43  ;;  %v180_v25 = vrot.slane %v1642_v1, %v1610_v48 }
 0x249   :  { %285 = vbcast.lane.b32.xlu1 %v279_v5, 264  ;;  %281 = vbcast.lane.b32.xlu0 %v279_v5, 256  ;;  %v191_v26 = vrot.slane %v1642_v1, %v1613_v49  ;;  %v202_v27 = vrot.slane %v1642_v1, %v1616_v50  ;;  %v213_v28 = vrot.slane %v1642_v1, %v1621_v54  ;;  %v362_v0 = vunpack.c.l.s4 %v1497_v63 }
 0x24d   :  { %296 = vbcast.lane.b32.xlu1 %v290_v7, 264  ;;  %292 = vbcast.lane.b32.xlu0 %v290_v7, 256 }
 0x251   :  { %314 = vbcast.lane.b32.xlu1 %v312_v10, 256  ;;  %303 = vbcast.lane.b32.xlu0 %v301_v11, 256 }
 0x255   :  { %336 = vbcast.lane.b32.xlu1 %v334_v15, 256  ;;  %325 = vbcast.lane.b32.xlu0 %v323_v16, 256 }
 0x259   :  { %951 = vbcast.lane.b32.xlu1 %v949_v17, 256  ;;  %940 = vbcast.lane.b32.xlu0 %v938_v18, 256 }
 0x25d   :  { %973 = vbcast.lane.b32.xlu1 %v971_v19, 256  ;;  %962 = vbcast.lane.b32.xlu0 %v960_v20, 256 }
 0x261   :  { %995 = vbcast.lane.b32.xlu1 %v993_v21, 256  ;;  %984 = vbcast.lane.b32.xlu0 %v982_v22, 256 }
 0x265   :  { %1017 = vbcast.lane.b32.xlu1 %v1015_v14, 256  ;;  %1006 = vbcast.lane.b32.xlu0 %v1004_v23, 256 }
 0x269   :  { %318 = vbcast.lane.b32.xlu1 %v312_v10, 264  ;;  %307 = vbcast.lane.b32.xlu0 %v301_v11, 264 }
 0x26d   :  { %340 = vbcast.lane.b32.xlu1 %v334_v15, 264  ;;  %329 = vbcast.lane.b32.xlu0 %v323_v16, 264 }
 0x271   :  { %955 = vbcast.lane.b32.xlu1 %v949_v17, 264  ;;  %944 = vbcast.lane.b32.xlu0 %v938_v18, 264 }
 0x275   :  { %977 = vbcast.lane.b32.xlu1 %v971_v19, 264  ;;  %966 = vbcast.lane.b32.xlu0 %v960_v20, 264 }
 0x279   :  { %999 = vbcast.lane.b32.xlu1 %v993_v21, 264  ;;  %988 = vbcast.lane.b32.xlu0 %v982_v22, 264 }
 0x27d   :  { %175 = vbcast.lane.b32.xlu1 %v169_v24, 264  ;;  %171 = vbcast.lane.b32.xlu0 %v169_v24, 256 }
 0x281   :  { %186 = vbcast.lane.b32.xlu1 %v180_v25, 264  ;;  %182 = vbcast.lane.b32.xlu0 %v180_v25, 256 }
 0x285   :  { %197 = vbcast.lane.b32.xlu1 %v191_v26, 264  ;;  %193 = vbcast.lane.b32.xlu0 %v191_v26, 256 }
 0x289   :  { %208 = vbcast.lane.b32.xlu1 %v202_v27, 264  ;;  %204 = vbcast.lane.b32.xlu0 %v202_v27, 256 }
 0x28d   :  { %219 = vbcast.lane.b32.xlu1 %v213_v28, 264  ;;  %215 = vbcast.lane.b32.xlu0 %v213_v28, 256 }
 0x291   :  { %230 = vbcast.lane.b32.xlu1 %v224_v6, 264  ;;  %226 = vbcast.lane.b32.xlu0 %v224_v6, 256 }
 0x295   :  { %241 = vbcast.lane.b32.xlu1 %v235_v8, 264  ;;  %237 = vbcast.lane.b32.xlu0 %v235_v8, 256 }
 0x299   :  { %252 = vbcast.lane.b32.xlu1 %v246_v9, 264  ;;  %248 = vbcast.lane.b32.xlu0 %v246_v9, 256 }
 0x29d   :  { %863 = vbcast.lane.b32.xlu1 %v1626_v57, 256  ;;  %852 = vbcast.lane.b32.xlu0 %v1629_v58, 256 }
 0x2a1   :  { %885 = vbcast.lane.b32.xlu1 %v1632_v59, 256  ;;  %874 = vbcast.lane.b32.xlu0 %v1635_v60, 256 }
 0x2a5   :  { %907 = vbcast.lane.b32.xlu1 %v1637_v61, 256  ;;  %896 = vbcast.lane.b32.xlu0 %v1645_v2, 256 }
 0x2a9   :  { %929 = vbcast.lane.b32.xlu1 %v1647_v3, 256  ;;  %918 = vbcast.lane.b32.xlu0 %v1649_v4, 256 }
 0x2ad   :  { %867 = vbcast.lane.b32.xlu1 %v1626_v57, 264  ;;  %856 = vbcast.lane.b32.xlu0 %v1629_v58, 264 }
 0x2b1   :  { %889 = vbcast.lane.b32.xlu1 %v1632_v59, 264  ;;  %878 = vbcast.lane.b32.xlu0 %v1635_v60, 264 }
 0x2b3   :  { %v264_v29 = vpop.permute.xlu1 %263  ;;  %v260_v30 = vpop.permute.xlu0 %259 }
 0x2b5   :  { %911 = vbcast.lane.b32.xlu1 %v1637_v61, 264  ;;  %900 = vbcast.lane.b32.xlu0 %v1645_v2, 264 }
 0x2b7   :  { %v275_v31 = vpop.permute.xlu1 %274  ;;  %v271_v32 = vpop.permute.xlu0 %270 }
 0x2b9   :  { %933 = vbcast.lane.b32.xlu1 %v1647_v3, 264  ;;  %922 = vbcast.lane.b32.xlu0 %v1649_v4, 264  ;;  %v363_v3 = vunpack.c.0.s8 %v362_v0  ;;  %v1498_v4 = vmov 1934713408  }
 0x2ba   :  { %v426_v5 = vunpack.c.l.s4 %v1498_v4 }
 0x2bb   :  { %v286_v33 = vpop.permute.xlu1 %285  ;;  %v282_v34 = vpop.permute.xlu0 %281  ;;  %v1743_v17 = vsub.s32 %v363_v3, %v1601_v40 }
 0x2bc   :  { %v427_v18 = vunpack.c.0.s8 %v426_v5 }
 0x2bd   :  { %1021 = vbcast.lane.b32.xlu1 %v1015_v14, 264  ;;  %1010 = vbcast.lane.b32.xlu0 %v1004_v23, 264 }
 0x2be   :  { %v1750_v28 = vsub.s32 %v427_v18, %v1601_v40 }
 0x2bf   :  { %v297_v36 = vpop.permute.xlu1 %296  ;;  %v293_v37 = vpop.permute.xlu0 %292 }
 0x2c1   :  { %722 = vperm.xlu1 %1467, %v25_v35  }
 0x2c3   :  { %v1694_v38 = vpop.permute.xlu1 %314  ;;  %v1696_v39 = vpop.permute.xlu0 %303 }
 0x2c7   :  { %v1698_v41 = vpop.permute.xlu1 %336  ;;  %v1700_v42 = vpop.permute.xlu0 %325 }
 0x2cb   :  { %v1702_v43 = vpop.permute.xlu1 %951  ;;  %v1704_v44 = vpop.permute.xlu0 %940 }
 0x2cf   :  { %v1706_v45 = vpop.permute.xlu1 %973  ;;  %v1708_v46 = vpop.permute.xlu0 %962 }
 0x2d3   :  { %v1710_v47 = vpop.permute.xlu1 %995  ;;  %v1712_v48 = vpop.permute.xlu0 %984 }
 0x2d7   :  { %v1714_v49 = vpop.permute.xlu1 %1017  ;;  %v1716_v50 = vpop.permute.xlu0 %1006 }
 0x2db   :  { %v1718_v51 = vpop.permute.xlu1 %318  ;;  %v1720_v52 = vpop.permute.xlu0 %307 }
 0x2df   :  { %v1722_v53 = vpop.permute.xlu1 %340  ;;  %v1724_v54 = vpop.permute.xlu0 %329 }
 0x2e3   :  { %v1726_v55 = vpop.permute.xlu1 %955  ;;  %v1728_v56 = vpop.permute.xlu0 %944 }
 0x2e7   :  { %v1730_v57 = vpop.permute.xlu1 %977  ;;  %v1732_v58 = vpop.permute.xlu0 %966 }
 0x2eb   :  { %v1734_v59 = vpop.permute.xlu1 %999  ;;  %v1736_v60 = vpop.permute.xlu0 %988 }
 0x2ef   :  { %v176_v61 = vpop.permute.xlu1 %175  ;;  %v172_v62 = vpop.permute.xlu0 %171 }
 0x2f0   :  { %v344_v9 = vsel %vm342_vm4, %v176_v61, %v264_v29  ;;  %v343_v7 = vsel %vm342_vm4, %v172_v62, %v260_v30 }
 0x2f3   :  { %v187_v1 = vpop.permute.xlu1 %186  ;;  %v183_v2 = vpop.permute.xlu0 %182 }
 0x2f4   :  { %v346_v21 = vsel %vm342_vm4, %v187_v1, %v275_v31  ;;  %v345_v22 = vsel %vm342_vm4, %v183_v2, %v271_v32 }
 0x2f7   :  { %v198_v6 = vpop.permute.xlu1 %197  ;;  %v194_v8 = vpop.permute.xlu0 %193 }
 0x2f8   :  { %v348_v10 = vsel %vm342_vm4, %v198_v6, %v286_v33  ;;  %v347_v11 = vsel %vm342_vm4, %v194_v8, %v282_v34 }
 0x2f9   :  { %v495_v12 = vcombine.low %v344_v9, %v348_v10  ;;  %v496_v13 = vcombine.high %v344_v9, %v348_v10  ;;  %v359_v15 = vcombine.low %v343_v7, %v347_v11  ;;  %v360_v16 = vcombine.high %v343_v7, %v347_v11 }
 0x2fb   :  { %v209_v19 = vpop.permute.xlu1 %208  ;;  %v205_v20 = vpop.permute.xlu0 %204  ;;  %v1753_v29 = vrot.slane %v495_v12, %v1743_v17  ;;  %v1756_v30 = vrot.slane %v496_v13, %v1743_v17 }
 0x2fc   :  { %v350_v14 = vsel %vm342_vm4, %v209_v19, %v297_v36  ;;  %v349_v23 = vsel %vm342_vm4, %v205_v20, %v293_v37  ;;  %v367_v36 = vrot.slane %v359_v15, %v1743_v17  ;;  %v1770_v37 = vrot.slane %v360_v16, %v1743_v17 }
 0x2fd   :  { %v511_v24 = vcombine.low %v346_v21, %v350_v14  ;;  %v512_v25 = vcombine.high %v346_v21, %v350_v14  ;;  %v375_v26 = vcombine.low %v345_v22, %v349_v23  ;;  %v376_v27 = vcombine.high %v345_v22, %v349_v23 }
 0x2ff   :  { %v1759_v31 = vrot.slane %v511_v24, %v1743_v17  ;;  %v1762_v32 = vrot.slane %v512_v25, %v1743_v17  ;;  %v383_v33 = vrot.slane %v375_v26, %v1743_v17  ;;  %v1766_v34 = vrot.slane %v376_v27, %v1743_v17  ;;  %v220_v35 = vpop.permute.xlu1 %219  ;;  %v216_v40 = vpop.permute.xlu0 %215 }
 0x300   :  { %v352_v10 = vsel %vm342_vm4, %v220_v35, %v1720_v52  ;;  %v351_v11 = vsel %vm342_vm4, %v216_v40, %v1696_v39 }
 0x301   :  { %v559_v61 = vcombine.low %v1753_v29, %v1759_v31  ;;  %v560_v62 = vcombine.high %v1753_v29, %v1759_v31  ;;  %v575_v63 = vcombine.low %v1756_v30, %v1762_v32  ;;  %v576_v0 = vcombine.high %v1756_v30, %v1762_v32 }
 0x302   :  { %v423_v1 = vcombine.low %v367_v36, %v383_v33  ;;  %v424_v2 = vcombine.high %v367_v36, %v383_v33  ;;  %v439_v3 = vcombine.low %v1770_v37, %v1766_v34  ;;  %v440_v4 = vcombine.high %v1770_v37, %v1766_v34 }
 0x303   :  { %v1785_v5 = vrot.slane %v576_v0, %v1750_v28  ;;  %v231_v6 = vpop.permute.xlu1 %230  ;;  %v227_v8 = vpop.permute.xlu0 %226 }
 0x304   :  { %v354_v22 = vsel %vm342_vm4, %v231_v6, %v1718_v51  ;;  %v353_v52 = vsel %vm342_vm4, %v227_v8, %v1694_v38 }
 0x307   :  { %v242_v9 = vpop.permute.xlu1 %241  ;;  %v238_v7 = vpop.permute.xlu0 %237 }
 0x308   :  { %v356_v12 = vsel %vm342_vm4, %v242_v9, %v1724_v54  ;;  %v355_v13 = vsel %vm342_vm4, %v238_v7, %v1700_v42 }
 0x309   :  { %v527_v15 = vcombine.low %v352_v10, %v356_v12  ;;  %v528_v16 = vcombine.high %v352_v10, %v356_v12  ;;  %v391_v18 = vcombine.low %v351_v11, %v355_v13  ;;  %v392_v19 = vcombine.high %v351_v11, %v355_v13 }
 0x30b   :  { %v253_v20 = vpop.permute.xlu1 %252  ;;  %v249_v21 = vpop.permute.xlu0 %248  ;;  %v535_v25 = vrot.slane %v527_v15, %v1743_v17  ;;  %v542_v26 = vrot.slane %v528_v16, %v1743_v17  ;;  %v406_v40 = vrot.slane %v392_v19, %v1743_v17  ;;  %v1815_v16 = vrot.slane %v423_v1, %v1750_v28 }
 0x30c   :  { %v358_v39 = vsel %vm342_vm4, %v253_v20, %v1722_v53  ;;  %v357_v54 = vsel %vm342_vm4, %v249_v21, %v1698_v41  ;;  %v399_v41 = vrot.slane %v391_v18, %v1743_v17  ;;  %v438_v18 = vrot.slane %v424_v2, %v1750_v28 }
 0x30d   :  { %v543_v14 = vcombine.low %v354_v22, %v358_v39  ;;  %v544_v42 = vcombine.high %v354_v22, %v358_v39  ;;  %v407_v23 = vcombine.low %v353_v52, %v357_v54  ;;  %v408_v24 = vcombine.high %v353_v52, %v357_v54 }
 0x30e   :  { %v1819_v19 = vrot.slane %v439_v3, %v1750_v28 }
 0x30f   :  { %v551_v27 = vrot.slane %v543_v14, %v1743_v17  ;;  %v558_v51 = vrot.slane %v544_v42, %v1743_v17  ;;  %v415_v38 = vrot.slane %v407_v23, %v1743_v17  ;;  %v422_v33 = vrot.slane %v408_v24, %v1743_v17  ;;  %v864_v53 = vpop.permute.xlu1 %863  ;;  %v853_v35 = vpop.permute.xlu0 %852 }
 0x310   :  { %v1025_v2 = vsel %vm342_vm4, %v864_v53, %v1702_v43  ;;  %v1023_v3 = vsel %vm342_vm4, %v853_v35, %v1704_v44  ;;  %v1851_v43 = vrot.slane %v560_v62, %v1750_v28  ;;  %v1868_v62 = vrot.slane %v575_v63, %v1750_v28 }
 0x311   :  { %v591_v36 = vcombine.low %v535_v25, %v551_v27  ;;  %v592_v0 = vcombine.high %v535_v25, %v551_v27  ;;  %v607_v6 = vcombine.low %v542_v26, %v558_v51  ;;  %v608_v8 = vcombine.high %v542_v26, %v558_v51 }
 0x312   :  { %v455_v9 = vcombine.low %v399_v41, %v415_v38  ;;  %v456_v7 = vcombine.high %v399_v41, %v415_v38  ;;  %v471_v10 = vcombine.low %v406_v40, %v422_v33  ;;  %v472_v11 = vcombine.high %v406_v40, %v422_v33 }
 0x313   :  { %v1812_v12 = vrot.slane %v608_v8, %v1750_v28  ;;  %v886_v13 = vpop.permute.xlu1 %885  ;;  %v875_v15 = vpop.permute.xlu0 %874  ;;  %v1832_v1 = vrot.slane %v592_v0, %v1750_v28  ;;  %v1862_v27 = vrot.slane %v559_v61, %v1750_v28  ;;  %v1871_v51 = vrot.slane %v607_v6, %v1750_v28 }
 0x314   :  { %v1029_v20 = vsel %vm342_vm4, %v886_v13, %v1706_v45  ;;  %v1825_v21 = vsel %vm342_vm4, %v875_v15, %v1708_v46  ;;  %v1828_v22 = vrot.slane %v455_v9, %v1750_v28  ;;  %v470_v52 = vrot.slane %v456_v7, %v1750_v28 }
 0x315   :  { %v1839_v45 = vrot.slane %v591_v36, %v1750_v28  ;;  %v1844_v14 = vrot.slane %v471_v10, %v1750_v28  ;;  %v1055_v42 = vcombine.low %v1025_v2, %v1029_v20  ;;  %v1039_v23 = vcombine.low %v1023_v3, %v1825_v21 }
 0x316   :  { %v488_v46 = vcombine.high %v1815_v16, %v1828_v22  ;;  %v489_v39 = vcombine.low %v438_v18, %v470_v52  ;;  %v490_v54 = vcombine.high %v438_v18, %v470_v52  ;;  %v1877_v38 = vrot.slane %v440_v4, %v1750_v28 }
 0x317   :  { %v908_v24 = vpop.permute.xlu1 %907  ;;  %v897_v25 = vpop.permute.xlu0 %896  ;;  %v491_v44 = vcombine.low %v1819_v19, %v1844_v14  ;;  %v492_v26 = vcombine.high %v1819_v19, %v1844_v14  ;;  %v1880_v33 = vrot.slane %v472_v11, %v1750_v28  ;;  %v623_v29 = vcombine.low %v1862_v27, %v1839_v45 }
 0x318   :  { %632 = vrot.lane.b32.xlu0 %v488_v46, %s1499_s4  ;;  %v624_v30 = vcombine.high %v1862_v27, %v1839_v45  ;;  %v625_v31 = vcombine.low %v1851_v43, %v1832_v1  ;;  %v1889_v32 = vrot.slane %v1055_v42, %v1743_v17  ;;  %v1892_v61 = vrot.slane %v1039_v23, %v1743_v17 }
 0x319   :  { %v1033_v34 = vsel %vm342_vm4, %v908_v24, %v1710_v47  ;;  %v1031_v37 = vsel %vm342_vm4, %v897_v25, %v1712_v48  ;;  %v493_v41 = vcombine.low %v1877_v38, %v1880_v33  ;;  %v494_v47 = vcombine.high %v1877_v38, %v1880_v33 }
 0x31a   :  { %v1056_v40 = vcombine.high %v1025_v2, %v1029_v20  ;;  %v626_v0 = vcombine.high %v1851_v43, %v1832_v1  ;;  %v628_v6 = vcombine.high %v1868_v62, %v1871_v51  ;;  %v1040_v8 = vcombine.high %v1023_v3, %v1825_v21 }
 0x31b   :  { %v930_v63 = vpop.permute.xlu1 %929  ;;  %v919_v4 = vpop.permute.xlu0 %918  ;;  %v1103_v9 = vcombine.low %v1892_v61, %v1889_v32  ;;  %v630_v15 = vcombine.high %v1785_v5, %v1812_v12  ;;  %v487_v18 = vcombine.low %v1815_v16, %v1828_v22 }
 0x31c   :  { %v1037_v53 = vsel %vm342_vm4, %v930_v63, %v1714_v49  ;;  %636 = vrot.lane.b32.xlu0 %v489_v39, %s1500_s10  ;;  %v1035_v35 = vsel %vm342_vm4, %v919_v4, %v1716_v50  ;;  %v627_v49 = vcombine.low %v1868_v62, %v1871_v51  ;;  %v629_v50 = vcombine.low %v1785_v5, %v1812_v12 }
 0x31d   :  { %v1087_v36 = vcombine.low %v1033_v34, %v1037_v53  ;;  %v1071_v48 = vcombine.low %v1031_v37, %v1035_v35  ;;  %v1926_v21 = vrot.slane %v1056_v40, %v1743_v17  ;;  %v1088_v52 = vcombine.high %v1033_v34, %v1037_v53 }
 0x31e   :  { %v1072_v2 = vcombine.high %v1031_v37, %v1035_v35  ;;  %v1929_v46 = vrot.slane %v1040_v8, %v1743_v17  ;;  %v1104_v39 = vcombine.high %v1892_v61, %v1889_v32  ;;  %v1934_v23 = vrot.slane %v1103_v9, %v1750_v28 }
 0x31f   :  { %v1095_v7 = vrot.slane %v1087_v36, %v1743_v17  ;;  %v1079_v10 = vrot.slane %v1071_v48, %v1743_v17  ;;  %v868_v11 = vpop.permute.xlu1 %867  ;;  %v857_v13 = vpop.permute.xlu0 %856  ;;  %v1102_v35 = vrot.slane %v1088_v52, %v1743_v17 }
 0x320   :  { %640 = vrot.lane.b32.xlu0 %v490_v54, %s1501_s11  ;;  %v1026_v25 = vsel %vm342_vm4, %v868_v11, %v1726_v55  ;;  %v1024_v34 = vsel %vm342_vm4, %v857_v13, %v1728_v56  ;;  %v1086_v55 = vrot.slane %v1072_v2, %v1743_v17  ;;  %v1118_v9 = vrot.slane %v1104_v39, %v1750_v28 }
 0x321   :  { %v1135_v20 = vcombine.low %v1079_v10, %v1095_v7  ;;  %v1136_v3 = vcombine.high %v1079_v10, %v1095_v7 }
 0x323   :  { %v890_v54 = vpop.permute.xlu1 %889  ;;  %v879_v42 = vpop.permute.xlu0 %878  ;;  %v1937_v24 = vrot.slane %v1135_v20, %v1750_v28  ;;  %v1150_v40 = vrot.slane %v1136_v3, %v1750_v28  ;;  %v1151_v20 = vcombine.low %v1086_v55, %v1102_v35  ;;  %v1119_v3 = vcombine.low %v1929_v46, %v1926_v21 }
 0x324   :  { %v1030_v37 = vsel %vm342_vm4, %v890_v54, %v1730_v57  ;;  %644 = vrot.lane.b32.xlu0 %v491_v44, %s1502_s12  ;;  %v1028_v32 = vsel %vm342_vm4, %v879_v42, %v1732_v58 }
 0x325   :  { %v1191_v61 = vcombine.low %v1026_v25, %v1030_v37  ;;  %v1192_v63 = vcombine.high %v1026_v25, %v1030_v37  ;;  %v1175_v4 = vcombine.low %v1024_v34, %v1028_v32  ;;  %v1176_v53 = vcombine.high %v1024_v34, %v1028_v32 }
 0x326   :  { %v1168_v56 = vcombine.high %v1934_v23, %v1937_v24  ;;  %v1169_v52 = vcombine.low %v1118_v9, %v1150_v40  ;;  %v1167_v2 = vcombine.low %v1934_v23, %v1937_v24  ;;  %v1170_v19 = vcombine.high %v1118_v9, %v1150_v40 }
 0x327   :  { %v1199_v57 = vrot.slane %v1191_v61, %v1743_v17  ;;  %v1206_v44 = vrot.slane %v1192_v63, %v1743_v17  ;;  %v1183_v36 = vrot.slane %v1175_v4, %v1743_v17  ;;  %v1190_v58 = vrot.slane %v1176_v53, %v1743_v17  ;;  %v912_v48 = vpop.permute.xlu1 %911  ;;  %v901_v8 = vpop.permute.xlu0 %900 }
 0x328   :  { %648 = vrot.lane.b32.xlu0 %v492_v26, %s1503_s13  ;;  %1312 = vrot.lane.b32.xlu1 %v1168_v56, %s1499_s4  ;;  %v1159_v14 = vrot.slane %v1151_v20, %v1750_v28  ;;  %v1152_v26 = vcombine.high %v1086_v55, %v1102_v35  ;;  %v1034_v39 = vsel %vm342_vm4, %v912_v48, %v1734_v59 }
 0x329   :  { %v1239_v7 = vcombine.low %v1183_v36, %v1199_v57  ;;  %v1240_v10 = vcombine.high %v1183_v36, %v1199_v57  ;;  %v1255_v11 = vcombine.low %v1190_v58, %v1206_v44  ;;  %v1256_v13 = vcombine.high %v1190_v58, %v1206_v44 }
 0x32a   :  { %v1127_v37 = vrot.slane %v1119_v3, %v1750_v28  ;;  %v1032_v32 = vsel %vm342_vm4, %v901_v8, %v1736_v60  ;;  %v1120_v35 = vcombine.high %v1929_v46, %v1926_v21  ;;  %v1166_v33 = vrot.slane %v1152_v26, %v1750_v28 }
 0x32b   :  { %v934_v54 = vpop.permute.xlu1 %933  ;;  %v923_v42 = vpop.permute.xlu0 %922  ;;  %v1254_v44 = vrot.slane %v1240_v10, %v1750_v28  ;;  %v1263_v20 = vrot.slane %v1255_v11, %v1750_v28 }
 0x32c   :  { %652 = vrot.lane.b32.xlu0 %v493_v41, %s1504_s14  ;;  %1316 = vrot.lane.b32.xlu1 %v1169_v52, %s1500_s10  ;;  %v1171_v60 = vcombine.low %v1127_v37, %v1159_v14  ;;  %v1172_v36 = vcombine.high %v1127_v37, %v1159_v14  ;;  %v1134_v58 = vrot.slane %v1120_v35, %v1750_v28 }
 0x32d   :  { %v1270_v52 = vrot.slane %v1256_v13, %v1750_v28 }
 0x32f   :  { %v1022_v25 = vpop.permute.xlu1 %1021  ;;  %v1011_v34 = vpop.permute.xlu0 %1010 }
 0x330   :  { %v1038_v61 = vsel %vm342_vm4, %v934_v54, %v1022_v25  ;;  %656 = vrot.lane.b32.xlu0 %v494_v47, %s1505_s15  ;;  %1320 = vrot.lane.b32.xlu1 %v1170_v19, %s1501_s11  ;;  %v1036_v41 = vsel %vm342_vm4, %v923_v42, %v1011_v34  ;;  %vm726_vm4 = vcmask 261120  }
 0x331   :  { %v1223_v59 = vcombine.low %v1034_v39, %v1038_v61  ;;  %v1224_v63 = vcombine.high %v1034_v39, %v1038_v61  ;;  %v1207_v4 = vcombine.low %v1032_v32, %v1036_v41  ;;  %v1208_v53 = vcombine.high %v1032_v32, %v1036_v41 }
 0x333   :  { %v1231_v55 = vrot.slane %v1223_v59, %v1743_v17  ;;  %v1238_v56 = vrot.slane %v1224_v63, %v1743_v17  ;;  %v1215_v40 = vrot.slane %v1207_v4, %v1743_v17  ;;  %v1222_v38 = vrot.slane %v1208_v53, %v1743_v17 }
 0x334   :  { %660 = vrot.lane.b32.xlu0 %v623_v29, %s1493_s29  ;;  %1324 = vrot.lane.b32.xlu1 %v1171_v60, %s1502_s12  ;;  %v1247_v17 = vrot.slane %v1239_v7, %v1750_v28  ;;  %v1173_v7 = vcombine.low %v1134_v58, %v1166_v33 }
 0x335   :  { %v1271_v47 = vcombine.low %v1215_v40, %v1231_v55  ;;  %v1272_v21 = vcombine.high %v1215_v40, %v1231_v55  ;;  %v1287_v46 = vcombine.low %v1222_v38, %v1238_v56  ;;  %v1288_v57 = vcombine.high %v1222_v38, %v1238_v56 }
 0x337   :  { %v1286_v48 = vrot.slane %v1272_v21, %v1750_v28  ;;  %v1295_v8 = vrot.slane %v1287_v46, %v1750_v28  ;;  %v1302_v29 = vrot.slane %v1288_v57, %v1750_v28  ;;  %v1279_v9 = vrot.slane %v1271_v47, %v1750_v28 }
 0x338   :  { %664 = vrot.lane.b32.xlu0 %v624_v30, %s1506_s16  ;;  %1328 = vrot.lane.b32.xlu1 %v1172_v36, %s1503_s13  ;;  %v1174_v28 = vcombine.high %v1134_v58, %v1166_v33 }
 0x339   :  { %v1304_v10 = vcombine.high %v1247_v17, %v1279_v9  ;;  %v1305_v3 = vcombine.low %v1254_v44, %v1286_v48  ;;  %v1306_v54 = vcombine.high %v1254_v44, %v1286_v48  ;;  %v1303_v42 = vcombine.low %v1247_v17, %v1279_v9 }
 0x33a   :  { %v1307_v19 = vcombine.low %v1263_v20, %v1295_v8  ;;  %v1308_v14 = vcombine.high %v1263_v20, %v1295_v8  ;;  %v1309_v26 = vcombine.low %v1270_v52, %v1302_v29  ;;  %v1310_v39 = vcombine.high %v1270_v52, %v1302_v29 }
 0x33c   :  { %1332 = vrot.lane.b32.xlu1 %v1173_v7, %s1504_s14  ;;  %1344 = vrot.lane.b32.xlu0 %v1304_v10, %s1506_s16 }
 0x340   :  { %1336 = vrot.lane.b32.xlu1 %v1174_v28, %s1505_s15  ;;  %1348 = vrot.lane.b32.xlu0 %v1305_v3, %s1507_s17  ;;  %v2031_v27 = vpop.permute.xlu1 %722 }
 0x344   :  { %1352 = vrot.lane.b32.xlu0 %v1306_v54, %s1508_s18  ;;  %1340 = vrot.lane.b32.xlu1 %v1303_v42, %s1493_s29 }
 0x348   :  { %1356 = vrot.lane.b32.xlu0 %v1307_v19, %s1509_s19  ;;  %668 = vrot.lane.b32.xlu1 %v625_v31, %s1507_s17 }
 0x34c   :  { %1360 = vrot.lane.b32.xlu0 %v1308_v14, %s1510_s20  ;;  %672 = vrot.lane.b32.xlu1 %v626_v0, %s1508_s18 }
 0x350   :  { %1364 = vrot.lane.b32.xlu0 %v1309_v26, %s1511_s21  ;;  %676 = vrot.lane.b32.xlu1 %v627_v49, %s1509_s19 }
 0x354   :  { %1368 = vrot.lane.b32.xlu0 %v1310_v39, %s1512_s22  ;;  %680 = vrot.lane.b32.xlu1 %v628_v6, %s1510_s20 }
 0x358   :  { %684 = vrot.lane.b32.xlu1 %v629_v50, %s1511_s21 }
 0x35c   :  { %688 = vrot.lane.b32.xlu1 %v630_v15, %s1512_s22 }
 0x38a   :  { %v633_v1 = vpop.permute.xlu0 %632 }
 0x38b   :  { %v692_v38 = vsel %vm691_vm5, %v487_v18, %v633_v1 }
 0x38e   :  { %v637_v45 = vpop.permute.xlu0 %636 }
 0x38f   :  { %v694_v47 = vsel %vm693_vm6, %v692_v38, %v637_v45 }
 0x392   :  { %v641_v43 = vpop.permute.xlu0 %640 }
 0x393   :  { %v696_v57 = vsel %vm695_vm7, %v694_v47, %v641_v43 }
 0x396   :  { %v645_v30 = vpop.permute.xlu0 %644 }
 0x397   :  { %v697_v44 = vsel %vm31_vm0, %v696_v57, %v645_v30 }
 0x39a   :  { %v1313_v31 = vpop.permute.xlu1 %1312  ;;  %v649_v0 = vpop.permute.xlu0 %648 }
 0x39b   :  { %v1371_v5 = vsel %vm691_vm5, %v1167_v2, %v1313_v31  ;;  %v699_v16 = vsel %vm698_vm8, %v697_v44, %v649_v0 }
 0x39e   :  { %v1317_v49 = vpop.permute.xlu1 %1316  ;;  %v653_v11 = vpop.permute.xlu0 %652 }
 0x39f   :  { %v1372_v12 = vsel %vm693_vm6, %v1371_v5, %v1317_v49  ;;  %v701_v18 = vsel %vm700_vm9, %v699_v16, %v653_v11 }
 0x3a2   :  { %v1321_v62 = vpop.permute.xlu1 %1320  ;;  %v657_v51 = vpop.permute.xlu0 %656 }
 0x3a3   :  { %v1373_v61 = vsel %vm695_vm7, %v1372_v12, %v1321_v62  ;;  %v703_v8 = vsel %vm702_vm10, %v701_v18, %v657_v51 }
 0x3a6   :  { %v1325_v6 = vpop.permute.xlu1 %1324  ;;  %v661_v13 = vpop.permute.xlu0 %660 }
 0x3a7   :  { %v1374_v41 = vsel %vm31_vm0, %v1373_v61, %v1325_v6  ;;  %v705_v9 = vsel %vm704_vm11, %v703_v8, %v661_v13 }
 0x3aa   :  { %v1329_v25 = vpop.permute.xlu1 %1328  ;;  %v665_v50 = vpop.permute.xlu0 %664 }
 0x3ab   :  { %v1375_v59 = vsel %vm698_vm8, %v1374_v41, %v1329_v25  ;;  %v707_v52 = vsel %vm706_vm12, %v705_v9, %v665_v50 }
 0x3ae   :  { %v1333_v34 = vpop.permute.xlu1 %1332  ;;  %v1345_v37 = vpop.permute.xlu0 %1344 }
 0x3af   :  { %v1376_v63 = vsel %vm700_vm9, %v1375_v59, %v1333_v34 }
 0x3b2   :  { %v1337_v15 = vpop.permute.xlu1 %1336  ;;  %v1349_v32 = vpop.permute.xlu0 %1348 }
 0x3b3   :  { %v1377_v24 = vsel %vm702_vm10, %v1376_v63, %v1337_v15 }
 0x3b6   :  { %v1341_v4 = vpop.permute.xlu1 %1340  ;;  %v1353_v23 = vpop.permute.xlu0 %1352 }
 0x3b7   :  { %v1378_v2 = vsel %vm704_vm11, %v1377_v24, %v1341_v4 }
 0x3b8   :  { %v1379_v60 = vsel %vm706_vm12, %v1378_v2, %v1345_v37 }
 0x3b9   :  { %v1380_v55 = vsel %vm708_vm13, %v1379_v60, %v1349_v32 }
 0x3ba   :  { %v669_v53 = vpop.permute.xlu1 %668  ;;  %v1357_v35 = vpop.permute.xlu0 %1356  ;;  %v1381_v33 = vsel %vm710_vm14, %v1380_v55, %v1353_v23 }
 0x3bb   :  { %v1382_v36 = vsel %vm712_vm15, %v1381_v33, %v1357_v35  ;;  %v709_v7 = vsel %vm708_vm13, %v707_v52, %v669_v53 }
 0x3be   :  { %v673_v56 = vpop.permute.xlu1 %672  ;;  %v1361_v40 = vpop.permute.xlu0 %1360 }
 0x3bf   :  { %v1383_v22 = vsel %vm714_vm1, %v1382_v36, %v1361_v40  ;;  %v711_v3 = vsel %vm710_vm14, %v709_v7, %v673_v56 }
 0x3c2   :  { %v677_v21 = vpop.permute.xlu1 %676  ;;  %v1365_v46 = vpop.permute.xlu0 %1364 }
 0x3c3   :  { %v1384_v58 = vsel %vm716_vm2, %v1383_v22, %v1365_v46  ;;  %v713_v54 = vsel %vm712_vm15, %v711_v3, %v677_v21 }
 0x3c6   :  { %v681_v17 = vpop.permute.xlu1 %680  ;;  %v1369_v48 = vpop.permute.xlu0 %1368 }
 0x3c7   :  { %v1385_v29 = vsel %vm718_vm3, %v1384_v58, %v1369_v48  ;;  %v715_v42 = vsel %vm714_vm1, %v713_v54, %v681_v17 }
 0x3c8   :  { %v1386_v20 = vadd.f32 %v1385_v29, %v2031_v27 }
 0x3ca   :  { %1388 = vst.msk [vmem:[#allocation2 + $0x8] sm:$0xff] %vm726_vm4, %v1386_v20  ;;  %v685_v10 = vpop.permute.xlu1 %684 }
 0x3cb   :  { %v717_v19 = vsel %vm716_vm2, %v715_v42, %v685_v10 }
 0x3ce   :  { %v689_v14 = vpop.permute.xlu1 %688 }
 0x3cf   :  { %v719_v26 = vsel %vm718_vm3, %v717_v19, %v689_v14 }
 0x3d0   :  { %v725_v39 = vadd.f32 %v2031_v27, %v719_v26 }
 0x3d2   :  { %727 = vst.msk [vmem:[#allocation2] sm:$0xff] %vm726_vm4, %v725_v39 }
 0x3d3   :  { %1479 = shalt.err (!%p1476_p4)
}
 0x3d4   :  { %s1480_s0 = scalar_lea.hbm %s2091_s5, 256 }
 0x3d5   :  { %p1481_p5 = scmp.ne.s32.totalorder %s2091_s5, %s1480_s0  ;;  %p1484_p6 = scmp.lt.u32.totalorder %s1480_s0, %s2091_s5 }
 0x3d7   :  { %p1486_p7 = pnand %p1484_p6, %p1481_p5 }
 0x3d9   :  { %1489 = shalt.err (!%p1486_p7)
}
 0x3da   :  { %s1514_s6 = smov 128  }
 0x3db   :  { %1400 = dma.vmem_to_hbm [thread:$0]  %s1395_s24, 256, %s2091_s5, [#allocation3], %s1514_s6, %s1514_s6, %s1502_s12  }
 0x3dc   :  { %1490 = dma.done.wait [#allocation3], 256  }
 0x3dd   :  { %1491 = vsyncadd [#allocation3], 4294967040 }
 0x3de   :  { %1404 = vsyncpa [#allocation3], 1 }

</bundles_post_ra>
